<compile_context>
chip_gen: v7x
topology: tpu7x:2x2x1
jax: 0.10.0
libtpu: 0.0.40
codegen_flags: <defaults>
</compile_context>

<pallas_src>
import jax
import jax.numpy as jnp
from jax.experimental import pallas as pl
from jax.experimental.pallas import tpu as pltpu

_LANES = 128
_DEFAULT_BLOCK_BYTES = 4 * 1024 * 1024   # per (single) buffer; 4 bufs resident
_VMEM_LIMIT_BYTES = 32 * 1024 * 1024     # safe on v5e/v6e/v7x physical VMEM


def _mish_kernel(x_ref, o_ref):
    xf = x_ref[...].astype(jnp.float32)
    # tanh(softplus(x)) via a single EUP exp:
    #   num   = (1+e)^2 - 1 = e*(e+2)      (cancellation-free for small x)
    #   denom = (1+e)^2 + 1 = num + 2
    # exp argument clamped at 20 (F.softplus threshold) so it never overflows.
    e = jnp.exp(jnp.minimum(xf, 20.0))
    num = e * (e + 2.0)
    denom = num + 2.0
    r = pl.reciprocal(denom, approx=True)    # cheap EUP vrcp
    r = r * (2.0 - denom * r)                # one Newton step (VPU) -> ~f32 exact
    t = num * r                              # == tanh(softplus(x)) for x <= 20
    y = jnp.where(xf > 20.0, xf, xf * t)     # x > 20: mish(x) == x exactly in f32
    o_ref[...] = y.astype(o_ref.dtype)


def _mish_math(xf):
    """Same math as the kernel, plain jnp (used only for the <128-elem tail)."""
    e = jnp.exp(jnp.minimum(xf, 20.0))
    num = e * (e + 2.0)
    t = num / (num + 2.0)
    return jnp.where(xf > 20.0, xf, xf * t)


def _round_up(v, m):
    return ((v + m - 1) // m) * m


def _block_rows(rows, itemsize, target_bytes):
    """Pick a block row count sized in bytes, sublane-aligned, >=2 grid steps."""
    sub = max(8, 32 // itemsize)             # 8 (f32) / 16 (bf16) / 32 (int8,fp8)
    br = max(sub, (target_bytes // (_LANES * itemsize) // sub) * sub)
    # Ensure the grid has at least 2 steps when the input allows it, so
    # dimension_semantics=("parallel",) can shard across v7x's two TCs.
    half = _round_up(pl.cdiv(rows, 2), sub)
    br = min(br, half)
    if br >= rows:
        return rows                          # single full-extent block is legal
    return br


def mish(x, *, target_block_bytes=_DEFAULT_BLOCK_BYTES):
    """Applies Mish elementwise to an array of arbitrary shape/dtype."""
    orig_shape = x.shape
    orig_dtype = x.dtype
    n = x.size
    if n == 0:
        return x

    itemsize = jnp.dtype(orig_dtype).itemsize
    flat = x.reshape(-1)
    n_aligned = (n // _LANES) * _LANES

    if n_aligned == 0:
        # Tiny (<128 element) input: no lane-dense slab to build.
        return _mish_math(flat.astype(jnp.float32)).astype(orig_dtype).reshape(orig_shape)

    rows = n_aligned // _LANES
    # Aligned case: pure reshape (no HBM copy under jit).  Ragged case: take
    # only the aligned prefix (tail handled separately below).
    x2d = (flat if n_aligned == n else flat[:n_aligned]).reshape(rows, _LANES)

    br = _block_rows(rows, itemsize, target_block_bytes)
    grid = (pl.cdiv(rows, br),)              # Pallas masks the partial final block.

    cost = pl.CostEstimate(
        flops=8 * n_aligned,
        transcendentals=n_aligned,
        bytes_accessed=2 * n_aligned * itemsize,
    )

    out2d = pl.pallas_call(
        _mish_kernel,
        out_shape=jax.ShapeDtypeStruct((rows, _LANES), orig_dtype),
        grid_spec=pltpu.PrefetchScalarGridSpec(
            num_scalar_prefetch=0,
            grid=grid,
            in_specs=[pl.BlockSpec((br, _LANES), lambda i: (i, 0))],
            out_specs=pl.BlockSpec((br, _LANES), lambda i: (i, 0)),
        ),
        compiler_params=pltpu.CompilerParams(
            dimension_semantics=("parallel",),   # shard grid across TCs (v7x)
            vmem_limit_bytes=_VMEM_LIMIT_BYTES,
        ),
        cost_estimate=cost,
    )(x2d)

    if n_aligned == n:
        return out2d.reshape(orig_shape)

    # Ragged tail (< 128 elements): identical math on the tiny remainder,
    # stitched back without padding/slicing the whole array.
    tail = flat[n_aligned:]
    tail_y = _mish_math(tail.astype(jnp.float32)).astype(orig_dtype)
    return jnp.concatenate([out2d.reshape(-1), tail_y]).reshape(orig_shape)


def _mish_ref(x):
    """PyTorch-faithful reference: x * tanh(softplus(x)), threshold=20."""
    xf = x.astype(jnp.float32)
    sp = jnp.where(xf > 20.0, xf, jnp.log1p(jnp.exp(jnp.minimum(xf, 20.0))))
    return (xf * jnp.tanh(sp)).astype(x.dtype)


if __name__ == "__main__":
    key = jax.random.PRNGKey(0)
    k1, k2, k3 = jax.random.split(key, 3)

    mish_jit = jax.jit(mish, static_argnames=("target_block_bytes",))

    # Small NCHW-style input consistent with typical usage of Mish.
    x1 = jax.random.normal(k1, (2, 4, 16, 16), dtype=jnp.float32) * 5.0
    # Multi-block case (small target bytes forces several grid steps + partial block).
    x2 = jax.random.normal(k2, (2600, 128), dtype=jnp.float32) * 10.0
    # Ragged case (element count not a multiple of 128).
    x3 = jax.random.normal(k3, (3, 7, 11), dtype=jnp.float32) * 5.0

    checks = [
        (x1, {}),
        (x2, {"target_block_bytes": 512 * 1024}),
        (x3, {}),
    ]
    for x, kwargs in checks:
        y = mish_jit(x, **kwargs)
        jax.block_until_ready(y)
        y_ref = _mish_ref(x)
        assert y.shape == x.shape and y.dtype == x.dtype
        assert jnp.allclose(y, y_ref, atol=1e-5, rtol=1e-4), float(
            jnp.max(jnp.abs(y - y_ref))
        )

    print("KERNEL_OK")
</pallas_src>

<mosaic_0001>
module attributes {stable_mosaic.version = 11 : i64} {
  func.func @_mish_kernel(%arg0: i32, %arg1: memref<8x128xf32, #tpu.memory_space<vmem>>, %arg2: memref<8x128xf32, #tpu.memory_space<vmem>>) attributes {dimension_semantics = [#tpu.dimension_semantics<parallel>], iteration_bounds = array<i64: 2>, scalar_prefetch = 0 : i64, scratch_operands = 0 : i64, tpu.core_type = #tpu.core_type<tc>, window_params = [{transform_indices = @transform_0, window_bounds = array<i64: 8, 128>}, {transform_indices = @transform_1, window_bounds = array<i64: 8, 128>}]} {
    %c0 = arith.constant 0 : index
    %c0_0 = arith.constant 0 : index
    %0 = vector.load %arg1[%c0, %c0_0] : memref<8x128xf32, #tpu.memory_space<vmem>>, vector<8x128xf32>
    %cst = arith.constant 2.000000e+01 : f32
    %1 = vector.broadcast %cst : f32 to vector<8x128xf32>
    %2 = arith.minimumf %0, %1 : vector<8x128xf32>
    %3 = math.exp %2 : vector<8x128xf32>
    %cst_1 = arith.constant 2.000000e+00 : f32
    %4 = vector.broadcast %cst_1 : f32 to vector<8x128xf32>
    %5 = arith.addf %3, %4 : vector<8x128xf32>
    %6 = arith.mulf %3, %5 : vector<8x128xf32>
    %cst_2 = arith.constant 2.000000e+00 : f32
    %7 = vector.broadcast %cst_2 : f32 to vector<8x128xf32>
    %8 = arith.addf %6, %7 : vector<8x128xf32>
    %9 = tpu.reciprocal %8 {approx = true} : vector<8x128xf32> -> vector<8x128xf32>
    %10 = arith.mulf %8, %9 : vector<8x128xf32>
    %cst_3 = arith.constant 2.000000e+00 : f32
    %11 = vector.broadcast %cst_3 : f32 to vector<8x128xf32>
    %12 = arith.subf %11, %10 : vector<8x128xf32>
    %13 = arith.mulf %9, %12 : vector<8x128xf32>
    %14 = arith.mulf %6, %13 : vector<8x128xf32>
    %cst_4 = arith.constant 2.000000e+01 : f32
    %15 = vector.broadcast %cst_4 : f32 to vector<8x128xf32>
    %16 = arith.cmpf ogt, %0, %15 : vector<8x128xf32>
    %17 = arith.mulf %0, %14 : vector<8x128xf32>
    %18 = arith.select %16, %0, %17 : vector<8x128xi1>, vector<8x128xf32>
    %c0_5 = arith.constant 0 : index
    %c0_6 = arith.constant 0 : index
    %19 = vector.load %arg2[%c0_5, %c0_6] : memref<8x128xf32, #tpu.memory_space<vmem>>, vector<8x128xf32>
    tpu.vector_store %arg2[%c0_5, %c0_6], %18 {strides = array<i32>} : memref<8x128xf32, #tpu.memory_space<vmem>>, vector<8x128xf32>,
    return
  }
  func.func @transform_0(%arg0: i32) -> (i32, i32) {
    %c0_i32 = arith.constant 0 : i32
    %c0_i32_0 = arith.constant 0 : i32
    return %arg0, %c0_i32 : i32, i32
  }
  func.func @transform_1(%arg0: i32) -> (i32, i32) {
    %c0_i32 = arith.constant 0 : i32
    %c0_i32_0 = arith.constant 0 : i32
    return %arg0, %c0_i32 : i32, i32
  }
}

</mosaic_0001>

<bundles_post_ra>
// kernel: mish.1
= control target key start
LH: loop header
LB: loop body
LE: loop exit
PB: predicated region body
PF: predicated region fallthrough
CT: control target
= control target key end

     0   :  { %s220_s6 = smov 0   ;;  %s237_s0 = inlined_call_operand.vmem [shape: f32[16,128], index: 0, kind: input, shape index: {}]   ;;  %s238_s1 = inlined_call_operand.vmem [shape: f32[16,128], index: 1, kind: output, shape index: {}]  }
   0x1 LB: > { %s181_s7 = sadd.s32 4294967295, %s208_s6   ;;  %p185_p0 = scmp.ge.s32.totalorder %s208_s6, 1  ;;  %s208_s6 = sphi %s220_s6, %s11_s6  }
   0x2   : > { %p86_p1 = scmp.lt.s32.totalorder %s208_s6, 3 }
   0x4   : > { %p87_p2 = pnand %p185_p0, %p86_p1 }
   0x5   : > { %p104_p3 = scmp.lt.s32.totalorder (!%p87_p2), %s181_s7, 1 }
   0x6   : > { %90 = sbr.rel (%p87_p2) target bundleno = 61 (0x3d), region = 24 }
   0xd   : > { %s240_s7 = smov (!%p104_p3, %s181_s7), 1 }
   0xe   : > { %s186_s8 = sshll.u32 %s240_s7, 3 }
   0xf   : > { %s107_s11 = scalar_lea.vmem %s237_s0, %s186_s8  ;;  %s111_s14 = scalar_lea.vmem %s238_s1, %s186_s8 }
  0x10   : > { %v112_v0 = vld [vmem:[%s107_s11] sm:$0xff] }
  0x11   : > { %v113_v1 = vmin.f32 %v112_v0, 20.0  ;;  %vm124_vm0 = vcmp.gt.f32.partialorder %v112_v0, 20.0 }
  0x13   : > { %v114_v2 = vmul.f32 1.442695, %v113_v1 }
  0x15   : > { %198 = vpow2.f32 %v114_v2 }
  0x1f   : > { %v199_v3 = vpop.eup %198 }
  0x20   : > { %v116_v4 = vadd.f32 2.0, %v199_v3 }
  0x22   : > { %v117_v5 = vmul.f32 %v199_v3, %v116_v4 }
  0x24   : > { %v118_v6 = vadd.f32 2.0, %v117_v5 }
  0x26   : > { %200 = vrcp.f32 %v118_v6 }
  0x30   : > { %v201_v7 = vpop.eup %200 }
  0x31   : > { %v120_v8 = vmul.f32 %v201_v7, %v118_v6 }
  0x33   : > { %v121_v9 = vsub.f32 2.0, %v120_v8 }
  0x35   : > { %v122_v10 = vmul.f32 %v201_v7, %v121_v9 }
  0x37   : > { %v123_v11 = vmul.f32 %v122_v10, %v117_v5 }
  0x39   : > { %v125_v12 = vmul.f32 %v123_v11, %v112_v0 }
  0x3b   : > { %v126_v13 = vsel %vm124_vm0, %v112_v0, %v125_v12 }
  0x3c   : > { %127 = vst [vmem:[%s111_s14] sm:$0xff] %v126_v13 }
  0x3d PF: > { %s11_s6 = sadd.s32 1, %s208_s6  }
  0x3e   : > { %p8_p4 = scmp.ge.s32.totalorder %s11_s6, 4  }
  0x40   :  { %10 = sbr.rel (!%p8_p4) target bundleno = 1 (0x1), region = 54 }

</bundles_post_ra>
